<compile_context>
chip_gen: v7x
topology: tpu7x:2x2x1
jax: 0.10.0
libtpu: 0.0.40
codegen_flags: <defaults>
</compile_context>

<pallas_src>
import functools

import jax
import jax.numpy as jnp
from jax.experimental import pallas as pl
from jax.experimental.pallas import tpu as pltpu


_TARGET_BLOCK_BYTES = 2 * 1024 * 1024     # per-block cap, two-pass path (all gens)
_FUSED_SLAB_BYTES = 4 * 1024 * 1024       # per-batch slab cap for the fused path
_FUSED_VMEM_LIMIT = 32 * 1024 * 1024      # scoped VMEM for the fused path
                                          # (4x slab double-buffered + headroom;
                                          #  fits v5e/v6e/v7x)


# ---------------------------------------------------------------------------
# Fused single-kernel fast path: one batch resident in VMEM.
#   reduce (VPU adds + one lane reduce) -> FC + sigmoid (VPU) -> scale
# ---------------------------------------------------------------------------
def _fused_kernel(x_ref, wt_ref, b_ref, o_ref, *, inv_n):
    # x_ref / o_ref: (1, C, D, HW); wt_ref: (D, D) = weight.T; b_ref: (1, D)
    xb = x_ref[0].astype(jnp.float32)                        # (C, D, HW)
    part = jnp.sum(xb, axis=0)                               # VPU adds -> (D, HW)
    mean = jnp.sum(part, axis=-1, keepdims=True) * inv_n     # one XLU reduce -> (D, 1)
    # Linear(D, D): u[0, d] = sum_k W[d, k] * mean[k]  (wt[k, d] == W[d, k])
    u = jnp.sum(wt_ref[...] * mean, axis=0, keepdims=True)   # (1, D), VPU only
    att = jax.nn.sigmoid(u + b_ref[...])                     # (1, D)
    o_ref[...] = (x_ref[...] * att[:, None, :, None]).astype(o_ref.dtype)


# ---------------------------------------------------------------------------
# Two-pass path, pass 1: tiled per-batch reduction fused with the tiny FC.
# ---------------------------------------------------------------------------
def _reduce_fc_kernel(x_ref, wt_ref, b_ref, att_ref, acc_ref, *, inv_n):
    # x_ref: (1, tc, D, t_hw); wt_ref: (D, D) = weight.T; b_ref: (1, D)
    # att_ref: (1, 1, D) per-batch output; acc_ref: VMEM (D, t_hw) f32
    ci = pl.program_id(1)
    hi = pl.program_id(2)

    @pl.when(jnp.logical_and(ci == 0, hi == 0))
    def _():
        acc_ref[...] = jnp.zeros_like(acc_ref)

    xb = x_ref[0].astype(jnp.float32)                        # (tc, D, t_hw)
    acc_ref[...] += jnp.sum(xb, axis=0)                      # VPU adds only

    @pl.when(jnp.logical_and(ci == pl.num_programs(1) - 1,
                             hi == pl.num_programs(2) - 1))
    def _():
        mean = jnp.sum(acc_ref[...], axis=-1, keepdims=True) * inv_n   # (D, 1)
        u = jnp.sum(wt_ref[...] * mean, axis=0, keepdims=True)          # (1, D)
        att_ref[0] = jax.nn.sigmoid(u + b_ref[...])


# ---------------------------------------------------------------------------
# Two-pass path, pass 2: streaming scale  out = x * att (broadcast over C, HW).
# ---------------------------------------------------------------------------
def _scale_kernel(att_ref, x_ref, o_ref):
    # att_ref: (1, 1, D) f32; x_ref / o_ref: (1, tc, D, t_hw)
    att = att_ref[...]                                       # (1, 1, D)
    o_ref[...] = (x_ref[...] * att[:, :, :, None]).astype(o_ref.dtype)


# ---------------------------------------------------------------------------
# Tile selection (two-pass path)
# ---------------------------------------------------------------------------
def _pick_tiles(C, D, HW, itemsize, target_bytes):
    """Pick (tc, t_hw) so one (1, tc, D, t_hw) block is ~<= target_bytes, the
    lane dim is a 128-multiple divisor of HW whenever possible, and small
    problems are NOT force-split into tiny blocks."""
    if HW % 128 == 0:
        t_hw = HW
        # Halve while the result stays a multiple of 128 (hence still divides
        # HW) and a single-channel block exceeds the budget.  The condition is
        # checked on the current size, so the final block respects the cap.
        while t_hw % 256 == 0 and D * t_hw * itemsize > target_bytes:
            t_hw //= 2
    else:
        t_hw = HW                       # full extent is always a legal block
    tc = 1
    for cand in range(C, 0, -1):
        if C % cand == 0 and cand * D * t_hw * itemsize <= target_bytes:
            tc = cand
            break
    return tc, t_hw


# ---------------------------------------------------------------------------
# Wrapper
# ---------------------------------------------------------------------------
def depth_attention(x, weight, bias, *,
                    fused_slab_bytes=_FUSED_SLAB_BYTES,
                    target_block_bytes=_TARGET_BLOCK_BYTES):
    """x: [B, C, D, H, W]; weight: [D, D] (out, in) as in nn.Linear; bias: [D]."""
    B, C, D, H, W = x.shape
    HW = H * W
    inv_n = 1.0 / float(C * HW)
    itemsize = jnp.dtype(x.dtype).itemsize

    x4 = x.reshape(B, C, D, HW)                  # H*W is the lane-dense dim
    w_t = weight.astype(jnp.float32).T           # (D, D), wt[k, d] = W[d, k]
    b_row = bias.astype(jnp.float32).reshape(1, D)

    slab_bytes = C * D * HW * itemsize

    # -------------------- fused single-kernel fast path ----------------------
    if slab_bytes <= fused_slab_bytes:
        out4 = pl.pallas_call(
            functools.partial(_fused_kernel, inv_n=inv_n),
            out_shape=jax.ShapeDtypeStruct((B, C, D, HW), x.dtype),
            grid_spec=pltpu.PrefetchScalarGridSpec(
                num_scalar_prefetch=0,
                grid=(B,),
                in_specs=[
                    pl.BlockSpec((1, C, D, HW), lambda b: (b, 0, 0, 0)),
                    pl.BlockSpec((D, D), lambda b: (0, 0)),
                    pl.BlockSpec((1, D), lambda b: (0, 0)),
                ],
                out_specs=pl.BlockSpec((1, C, D, HW), lambda b: (b, 0, 0, 0)),
            ),
            compiler_params=pltpu.CompilerParams(
                dimension_semantics=("parallel",),
                vmem_limit_bytes=_FUSED_VMEM_LIMIT),
        )(x4, w_t, b_row)
        return out4.reshape(B, C, D, H, W)

    # ----------------------- general two-pass path ---------------------------
    # Cap blocks when H*W is not 128-aligned: pad the lane dim once so it can
    # be tiled 128-dense.  Zeros contribute nothing to the sums (we divide by
    # the ORIGINAL C*HW) and the padding is sliced off at the end.
    HW_pad = HW
    if HW % 128 != 0 and D * HW * itemsize > target_block_bytes:
        HW_pad = ((HW + 127) // 128) * 128
        x4 = jnp.pad(x4, ((0, 0), (0, 0), (0, 0), (0, HW_pad - HW)))

    tc, t_hw = _pick_tiles(C, D, HW_pad, itemsize, target_block_bytes)
    grid = (B, C // tc, HW_pad // t_hw)

    # Pass 1: tiled reduction fused with the tiny FC + sigmoid -> att[B, 1, D].
    att = pl.pallas_call(
        functools.partial(_reduce_fc_kernel, inv_n=inv_n),
        out_shape=jax.ShapeDtypeStruct((B, 1, D), jnp.float32),
        grid_spec=pltpu.PrefetchScalarGridSpec(
            num_scalar_prefetch=0,
            grid=grid,
            in_specs=[
                pl.BlockSpec((1, tc, D, t_hw), lambda b, ci, hi: (b, ci, 0, hi)),
                pl.BlockSpec((D, D), lambda b, ci, hi: (0, 0)),
                pl.BlockSpec((1, D), lambda b, ci, hi: (0, 0)),
            ],
            out_specs=pl.BlockSpec((1, 1, D), lambda b, ci, hi: (b, 0, 0)),
            scratch_shapes=[pltpu.VMEM((D, t_hw), jnp.float32)],
        ),
        compiler_params=pltpu.CompilerParams(
            dimension_semantics=("parallel", "arbitrary", "arbitrary")),
    )(x4, w_t, b_row)

    # Pass 2: streaming, fully-parallel scale.
    # TODO(synk): optionally alias the output onto x4 (input_output_aliases)
    # when the caller no longer needs x.
    out4 = pl.pallas_call(
        _scale_kernel,
        out_shape=jax.ShapeDtypeStruct((B, C, D, HW_pad), x.dtype),
        grid_spec=pltpu.PrefetchScalarGridSpec(
            num_scalar_prefetch=0,
            grid=grid,
            in_specs=[
                pl.BlockSpec((1, 1, D), lambda b, ci, hi: (b, 0, 0)),
                pl.BlockSpec((1, tc, D, t_hw), lambda b, ci, hi: (b, ci, 0, hi)),
            ],
            out_specs=pl.BlockSpec((1, tc, D, t_hw), lambda b, ci, hi: (b, ci, 0, hi)),
        ),
        compiler_params=pltpu.CompilerParams(
            dimension_semantics=("parallel", "parallel", "parallel")),
    )(att, x4)

    if HW_pad != HW:
        out4 = out4[..., :HW]
    return out4.reshape(B, C, D, H, W)


def reference(x, weight, bias):
    att = jnp.mean(x, axis=(3, 4))                 # [B, C, D]
    att = jnp.mean(att, axis=1)                    # [B, D]
    att = jax.nn.sigmoid(att @ weight.T + bias)    # [B, D]
    return x * att[:, None, :, None, None]


if __name__ == "__main__":
    key = jax.random.PRNGKey(0)
    kx, kw, kb = jax.random.split(key, 3)

    B, C, D, H, W = 2, 4, 8, 16, 16
    x = jax.random.normal(kx, (B, C, D, H, W), dtype=jnp.float32)
    # deterministic Linear(D, D) params (kaiming-uniform-ish bound)
    bound = 1.0 / (D ** 0.5)
    weight = jax.random.uniform(kw, (D, D), jnp.float32, -bound, bound)
    bias = jax.random.uniform(kb, (D,), jnp.float32, -bound, bound)

    ref = reference(x, weight, bias)

    # Fused single-kernel fast path (batch slab fits in VMEM).
    out_fused = jax.block_until_ready(depth_attention(x, weight, bias))
    assert out_fused.shape == (B, C, D, H, W)
    assert jnp.allclose(out_fused, ref, atol=1e-5, rtol=1e-5)

    # Two-pass path (forced, to exercise the tiled reduce+FC and scale kernels).
    out_two = jax.block_until_ready(
        depth_attention(x, weight, bias, fused_slab_bytes=0))
    assert out_two.shape == (B, C, D, H, W)
    assert jnp.allclose(out_two, ref, atol=1e-5, rtol=1e-5)

    print("KERNEL_OK")
</pallas_src>

<mosaic_0001>
module attributes {stable_mosaic.version = 11 : i64} {
  func.func @_fused_kernel(%arg0: i32, %arg1: memref<1x4x8x256xf32, #tpu.memory_space<vmem>>, %arg2: memref<8x8xf32, #tpu.memory_space<vmem>>, %arg3: memref<1x8xf32, #tpu.memory_space<vmem>>, %arg4: memref<1x4x8x256xf32, #tpu.memory_space<vmem>>) attributes {dimension_semantics = [#tpu.dimension_semantics<parallel>], iteration_bounds = array<i64: 2>, scalar_prefetch = 0 : i64, scratch_operands = 0 : i64, tpu.core_type = #tpu.core_type<tc>, window_params = [{transform_indices = @transform_0, window_bounds = array<i64: 1, 4, 8, 256>}, {pipeline_mode = #tpu.pipeline_mode<synchronous>, transform_indices = @transform_1, window_bounds = array<i64: 8, 8>}, {pipeline_mode = #tpu.pipeline_mode<synchronous>, transform_indices = @transform_2, window_bounds = array<i64: 1, 8>}, {transform_indices = @transform_3, window_bounds = array<i64: 1, 4, 8, 256>}]} {
    %c0 = arith.constant 0 : index
    %c0_0 = arith.constant 0 : index
    %c0_1 = arith.constant 0 : index
    %c0_2 = arith.constant 0 : index
    %0 = vector.load %arg1[%c0, %c0_0, %c0_1, %c0_2] : memref<1x4x8x256xf32, #tpu.memory_space<vmem>>, vector<1x4x8x256xf32>
    %1 = vector.shape_cast %0 : vector<1x4x8x256xf32> to vector<4x8x256xf32>
    %cst = arith.constant dense<0.000000e+00> : vector<8x256xf32>
    %2 = vector.multi_reduction <add>, %1, %cst [0] : vector<4x8x256xf32> to vector<8x256xf32>
    %cst_3 = arith.constant dense<0.000000e+00> : vector<8xf32>
    %3 = vector.multi_reduction <add>, %2, %cst_3 [1] : vector<8x256xf32> to vector<8xf32>
    %4 = vector.shape_cast %3 : vector<8xf32> to vector<8x1xf32>
    %cst_4 = arith.constant 9.765625E-4 : f32
    %5 = vector.broadcast %cst_4 : f32 to vector<8x1xf32>
    %6 = arith.mulf %4, %5 : vector<8x1xf32>
    %c0_5 = arith.constant 0 : index
    %c0_6 = arith.constant 0 : index
    %7 = vector.load %arg2[%c0_5, %c0_6] : memref<8x8xf32, #tpu.memory_space<vmem>>, vector<8x8xf32>
    %8 = vector.broadcast %6 : vector<8x1xf32> to vector<8x8xf32>
    %9 = arith.mulf %7, %8 : vector<8x8xf32>
    %cst_7 = arith.constant dense<0.000000e+00> : vector<8xf32>
    %10 = vector.multi_reduction <add>, %9, %cst_7 [0] : vector<8x8xf32> to vector<8xf32>
    %11 = vector.shape_cast %10 : vector<8xf32> to vector<1x8xf32>
    %c0_8 = arith.constant 0 : index
    %c0_9 = arith.constant 0 : index
    %12 = vector.load %arg3[%c0_8, %c0_9] : memref<1x8xf32, #tpu.memory_space<vmem>>, vector<1x8xf32>
    %13 = arith.addf %11, %12 : vector<1x8xf32>
    %14 = arith.negf %13 : vector<1x8xf32>
    %15 = math.exp %14 : vector<1x8xf32>
    %cst_10 = arith.constant 1.000000e+00 : f32
    %16 = vector.broadcast %cst_10 : f32 to vector<1x8xf32>
    %17 = arith.addf %16, %15 : vector<1x8xf32>
    %18 = arith.divf %16, %17 : vector<1x8xf32>
    %c0_11 = arith.constant 0 : index
    %c0_12 = arith.constant 0 : index
    %c0_13 = arith.constant 0 : index
    %c0_14 = arith.constant 0 : index
    %19 = vector.load %arg1[%c0_11, %c0_12, %c0_13, %c0_14] : memref<1x4x8x256xf32, #tpu.memory_space<vmem>>, vector<1x4x8x256xf32>
    %20 = vector.shape_cast %18 : vector<1x8xf32> to vector<1x1x8x1xf32>
    %21 = vector.broadcast %20 : vector<1x1x8x1xf32> to vector<1x4x8x256xf32>
    %22 = arith.mulf %19, %21 : vector<1x4x8x256xf32>
    %c0_15 = arith.constant 0 : index
    %c0_16 = arith.constant 0 : index
    %c0_17 = arith.constant 0 : index
    %c0_18 = arith.constant 0 : index
    %23 = vector.load %arg4[%c0_15, %c0_16, %c0_17, %c0_18] : memref<1x4x8x256xf32, #tpu.memory_space<vmem>>, vector<1x4x8x256xf32>
    tpu.vector_store %arg4[%c0_15, %c0_16, %c0_17, %c0_18], %22 {strides = array<i32>} : memref<1x4x8x256xf32, #tpu.memory_space<vmem>>, vector<1x4x8x256xf32>,
    return
  }
  func.func @transform_0(%arg0: i32) -> (i32, i32, i32, i32) {
    %c0_i32 = arith.constant 0 : i32
    %c0_i32_0 = arith.constant 0 : i32
    %c0_i32_1 = arith.constant 0 : i32
    %c0_i32_2 = arith.constant 0 : i32
    return %arg0, %c0_i32, %c0_i32_0, %c0_i32_1 : i32, i32, i32, i32
  }
  func.func @transform_1(%arg0: i32) -> (i32, i32) {
    %c0_i32 = arith.constant 0 : i32
    %c0_i32_0 = arith.constant 0 : i32
    %c0_i32_1 = arith.constant 0 : i32
    return %c0_i32, %c0_i32_0 : i32, i32
  }
  func.func @transform_2(%arg0: i32) -> (i32, i32) {
    %c0_i32 = arith.constant 0 : i32
    %c0_i32_0 = arith.constant 0 : i32
    %c0_i32_1 = arith.constant 0 : i32
    return %c0_i32, %c0_i32_0 : i32, i32
  }
  func.func @transform_3(%arg0: i32) -> (i32, i32, i32, i32) {
    %c0_i32 = arith.constant 0 : i32
    %c0_i32_0 = arith.constant 0 : i32
    %c0_i32_1 = arith.constant 0 : i32
    %c0_i32_2 = arith.constant 0 : i32
    return %arg0, %c0_i32, %c0_i32_0, %c0_i32_1 : i32, i32, i32, i32
  }
}

</mosaic_0001>

<bundles_post_ra>
// kernel: tpu_custom_call.1
= control target key start
LH: loop header
LB: loop body
LE: loop exit
PB: predicated region body
PF: predicated region fallthrough
CT: control target
= control target key end

     0   :  { %8 = vsyncpa [#allocation3], 0  ;;  %s804_s0 = inlined_call_operand.hbm [shape: f32[2,4,8,256], index: 0, kind: input, shape index: {}]   ;;  %s805_s1 = inlined_call_operand.hbm [shape: f32[8,8], index: 1, kind: input, shape index: {}]   ;;  %s806_s2 = inlined_call_operand.vmem [shape: f32[1,8], index: 2, kind: input, shape index: {}]   ;;  %s807_s3 = inlined_call_operand.hbm [shape: f32[2,4,8,256], index: 3, kind: output, shape index: {}]  }
   0x1   :  { %10 = vsyncpa [#allocation3 + $0x1], 0 }
   0x2   :  { %11 = vsyncpa [#allocation6], 0 }
   0x3   :  { %12 = vsyncpa [#allocation4], 0 }
   0x4   :  { %14 = vsyncpa [#allocation4 + $0x1], 0  ;;  %s599_s12 = smov 0   ;;  %s601_s13 = smov 0  }
   0x5   :  { %s603_s14 = smov 0   ;;  %s605_s15 = smov 0  }
   0x6 LB: > { %s620_s16 = sadd.s32 4294967295, %s570_s15   ;;  %s358_s17 = sadd.s32 4294967294, %s570_s15   ;;  %s570_s15 = sphi %s605_s15, %s832_s15   ;;  %s566_s14 = sphi %s603_s14, %s831_s14   ;;  %s562_s13 = sphi %s601_s13, %s830_s13   ;;  %s558_s12 = sphi %s599_s12, %s829_s12  }
   0x7   : > { %s624_s18 = sadd.s32 1, %s570_s15   ;;  %s27_s19 = sadd.s32 1, %s566_s14 }
   0x8   : > { %s24_s20 = ssub.s32 %s570_s15, %s624_s18  ;;  %p34_p0 = scmp.ne.s32.totalorder %s566_s14, %s562_s13 }
   0x9   : > { %p25_p1 = scmp.eq.s32.totalorder %s24_s20, 0  ;;  %p35_p2 = scmp.eq.s32.totalorder %s570_s15, 0 }
   0xa   : > { %p40_p3 = scmp.ne.s32.totalorder %s562_s13, %s558_s12  ;;  %p808_p4 = scmp.eq.s32.totalorder %s620_s16, 0 }
   0xb   : > { %s636_s21 = scalar_select %p25_p1, %s566_s14, %s27_s19  }
   0xc   : > { %p638_p5 = por %p35_p2, %p34_p0  ;;  %p644_p6 = por %p808_p4, %p40_p3 }
   0xd   : > { %p106_p7 = scmp.eq.s32.totalorder %s620_s16, 1  ;;  %p112_p8 = scmp.eq.s32.totalorder %s358_s17, 1 }
   0xe   : > { %s814_s23 = scalar_select %p644_p6, 1, 0 }
   0xf   : > { %p359_p9 = scmp.ge.s32.totalorder %s570_s15, 1  ;;  %p119_p10 = scmp.lt.s32.totalorder %s570_s15, 3 }
  0x10   : > { %p651_p11 = por %p106_p7, %p34_p0  ;;  %p655_p12 = por %p112_p8, %p40_p3 }
  0x11   : > { %p659_p13 = pnand %p359_p9, %p119_p10  ;;  %s572_s27 = smov [#allocation5]  }
  0x12   : > { %s815_s24 = scalar_select %p651_p11, 1, 0 }
  0x13   : > { %s816_s25 = scalar_select %p655_p12, 1, 0 }
  0x14   : > { %s817_s26 = scalar_select %p659_p13, 1, 0 }
  0x15   : > { %p385_p2 = pneg %p659_p13  ;;  %s132_s28 = sshll.u32 %s572_s27, 4  ;;  %s133_s28 = int_to_ptr.vmem [resolvable:$true] %s132_s28 }
  0x16   : > { %p398_p4 = scmp.lt.s32.totalorder %s570_s15, 2  ;;  %p818_p0 = scmp.eq.s32.totalorder %s620_s16, 0 }
  0x17   : > { %s146_s30 = sand.u32 1, %s566_s14   ;;  %s442_s8 = scalar_lea.hbm %s805_s1, 128 }
  0x18   : > { %p669_p7 = pnand %p385_p2, %p818_p0  ;;  %p676_p3 = pnand %p398_p4, %p638_p5 }
  0x19   : > { %s362_s5 = sshll.u32 %s146_s30, 6  ;;  %p443_p8 = scmp.ne.s32.totalorder %s805_s1, %s442_s8 }
  0x1a   : > { %s820_s4 = scalar_select %p676_p3, 1, 0 }
  0x1b   : > { %p444_p9 = pneg %p669_p7  ;;  %p449_p4 = scmp.lt.u32.totalorder %s442_s8, %s805_s1 }
  0x1d   : > { %p445_p10 = pnand %p444_p9, %p443_p8 }
  0x1f   : > { %p446_p2 = pneg %p445_p10 }
  0x21   : > { %p451_p5 = pnand %p449_p4, %p446_p2 }
  0x23   : > { %454 = shalt.err (!%p451_p5)
}
  0x24   : > { %s455_s19 = scalar_lea.vmem %s133_s28, 128  ;;  %p463_p11 = scmp.lt.s32.totalorder %s133_s28, %s133_s28 }
  0x25   : > { %p456_p0 = scmp.ne.s32.totalorder %s133_s28, %s455_s19  ;;  %p464_p6 = scmp.lt.s32.totalorder %s455_s19, %s455_s19 }
  0x27   : > { %p458_p1 = pnand %p456_p0, %p444_p9  ;;  %p465_p13 = por %p464_p6, %p463_p11 }
  0x29   : > { %p459_p12 = pneg %p458_p1 }
  0x2b   : > { %p466_p3 = pnand %p465_p13, %p459_p12 }
  0x2d   : > { %469 = shalt.err (!%p466_p3)
}
  0x2e   : > { %388 = dma.hbm_to_vmem [thread:$0]  (!%p669_p7), %s805_s1, 128, %s133_s28, [#allocation6]  }
  0x2f   : > { %s375_s27 = sshll.u32 %s570_s15, 10  ;;  %s150_s6 = scalar_lea.vmem [#allocation2], %s362_s5 }
  0x30   : > { %s157_s7 = sshll.u32 %s150_s6, 4  ;;  %s700_s10 = scalar_lea.hbm %s804_s0, %s375_s27  ;;  %s702_s7 = int_to_ptr.vmem [resolvable:$true] %s157_s7 }
  0x31   : > { %s704_s29 = scalar_lea.sflag [#allocation3], %s146_s30  ;;  %s470_s11 = scalar_lea.hbm %s700_s10, 1024 }
  0x32   : > { %p471_p6 = scmp.ne.s32.totalorder %s700_s10, %s470_s11  ;;  %p821_p11 = scmp.ne.s32.totalorder %s820_s4, 0 }
  0x33   : > { %s475_s17 = scalar_lea.hbm %s804_s0, 2048  ;;  %p476_p7 = scmp.lt.u32.totalorder %s700_s10, %s804_s0 }
  0x34   : > { %p472_p12 = pneg %p821_p11  ;;  %p477_p3 = scmp.lt.u32.totalorder %s475_s17, %s470_s11 }
  0x35   : > { %p479_p9 = scmp.lt.u32.totalorder %s470_s11, %s700_s10 }
  0x36   : > { %p473_p13 = pnand %p472_p12, %p471_p6  ;;  %p478_p8 = por %p477_p3, %p476_p7 }
  0x38   : > { %p474_p1 = pneg %p473_p13  ;;  %p480_p10 = por %p479_p9, %p478_p8 }
  0x3a   : > { %p481_p2 = pnand %p480_p10, %p474_p1 }
  0x3c   : > { %484 = shalt.err (!%p481_p2)
}
  0x3d   : > { %s485_s30 = scalar_lea.vmem %s702_s7, 1024  ;;  %s573_s22 = smov [#allocation2]  }
  0x3e   : > { %p486_p4 = scmp.ne.s32.totalorder %s702_s7, %s485_s30  ;;  %s490_s27 = sshll.u32 %s573_s22, 4  ;;  %s491_s27 = int_to_ptr.vmem [resolvable:$false] %s490_s27 }
  0x3f   : > { %s492_s6 = scalar_lea.vmem %s491_s27, 2048  ;;  %p493_p6 = scmp.lt.s32.totalorder %s702_s7, %s491_s27 }
  0x40   : > { %p488_p5 = pnand %p486_p4, %p472_p12  ;;  %p494_p13 = scmp.lt.s32.totalorder %s492_s6, %s485_s30 }
  0x42   : > { %p489_p0 = pneg %p488_p5  ;;  %p495_p7 = por %p494_p13, %p493_p6 }
  0x44   : > { %p496_p3 = pnand %p495_p7, %p489_p0 }
  0x46   : > { %499 = shalt.err (!%p496_p3)
}
  0x47   : > { %s574_s8 = smov 256   ;;  %s575_s9 = smov 16  }
  0x48   : > { %392 = dma.hbm_to_vmem [thread:$0]  (!%p821_p11), %s700_s10, 1024, %s702_s7, %s704_s29, %s574_s8, %s574_s8, %s575_s9  }
  0x49   : > { %p822_p12 = scmp.ne.s32.totalorder %s817_s26, 0 }
  0x4a   : > { %s735_s11 = sand.u32 (!%p822_p12), 1, %s562_s13   ;;  %p823_p1 = scmp.ne.s32.totalorder (!%p822_p12), %s814_s23, 0 }
  0x4b   : > { %169 = sbr.rel (%p822_p12) target bundleno = 420 (0x1a4), region = 32  ;;  %s366_s28 = sshll.u32 (!%p822_p12), %s735_s11, 6 }
  0x4c   : > { %s172_s5 = scalar_lea.sflag (!%p822_p12), [#allocation3], %s735_s11  ;;  %s175_s17 = scalar_lea.vmem (!%p822_p12), [#allocation2], %s366_s28 }
  0x52   : > { %545 = dma.done.wait (%p823_p1), %s172_s5, 1024  }
  0x53   : > { %547 = vsyncadd (%p823_p1), %s172_s5, 4294966272  ;;  %p824_p11 = scmp.eq.s32.totalorder %s620_s16, 0 }
  0x55   : > { %549 = dma.done.wait (%p824_p11), [#allocation6], 128   ;;  %p825_p8 = pmov %p824_p11 }
  0x56   : > { %v202_v0 = vld [vmem:[%s175_s17] sm:$0xff]  ;;  %v203_v1 = vld [vmem:[%s175_s17 + $0x8] sm:$0xff]  ;;  %v204_v2 = vld [vmem:[%s175_s17 + $0x10] sm:$0xff]  ;;  %vm222_vm0 = vcmask 64512   ;;  %v238_v31 = vlaneseq  ;;  %s376_s4 = sshll.u32 %s620_s16, 10  ;;  %s201_s7 = scalar_lea.vmem [#allocation7], %s366_s28 }
  0x57   : > { %551 = vsyncadd (%p825_p8), [#allocation6], 4294967168  ;;  %v205_v3 = vld [vmem:[%s175_s17 + $0x18] sm:$0xff]  ;;  %v206_v4 = vld [vmem:[%s175_s17 + $0x20] sm:$0xff]  ;;  %v210_v6 = vadd.f32 %v204_v2, %v202_v0  ;;  %s275_s10 = sshll.u32 %s201_s7, 4  ;;  %s758_s20 = scalar_lea.hbm %s807_s3, %s376_s4  ;;  %s760_s10 = int_to_ptr.vmem [resolvable:$true] %s275_s10 }
  0x58   : > { %v207_v5 = vld [vmem:[%s175_s17 + $0x28] sm:$0xff]  ;;  %v208_v7 = vld [vmem:[%s175_s17 + $0x30] sm:$0xff]  ;;  %v213_v8 = vadd.f32 %v205_v3, %v203_v1  ;;  %v209_v9 = vld [vmem:[%s175_s17 + $0x38] sm:$0xff]  ;;  %v239_v32 = vshrl.u32 %v238_v31, 7  ;;  %s262_s16 = scalar_lea.sflag [#allocation4], %s735_s11  ;;  %s500_s30 = scalar_lea.vmem %s760_s10, 1024 }
  0x59   : > { %v211_v10 = vadd.f32 %v210_v6, %v206_v4  ;;  %v220_v15 = vld [vmem:[#allocation5] sm:$0xff]  ;;  %p501_p9 = scmp.ne.s32.totalorder %s760_s10, %s500_s30  ;;  %p826_p10 = scmp.ne.s32.totalorder %s815_s24, 0 }
  0x5a   : > { %v214_v11 = vadd.f32 %v213_v8, %v207_v5  ;;  %v230_v25 = vld [vmem:[%s806_s2] sm:$0x1]  ;;  %v240_v33 = vsub.s32 0, %v239_v32  ;;  %s576_s22 = smov [#allocation7]  }
  0x5b   : > { %v212_v12 = vadd.f32 %v211_v10, %v208_v7  ;;  %p502_p2 = pnand %p501_p9, %p826_p10  ;;  %s504_s27 = sshll.u32 %s576_s22, 4  ;;  %s505_s27 = int_to_ptr.vmem [resolvable:$false] %s504_s27 }
  0x5c   : > { %v215_v13 = vadd.f32 %v214_v11, %v209_v9  ;;  %s506_s6 = scalar_lea.vmem %s505_s27, 2048  ;;  %p507_p5 = scmp.lt.s32.totalorder %s760_s10, %s505_s27 }
  0x5d   : > { %p503_p4 = pneg %p502_p2  ;;  %p508_p0 = scmp.lt.s32.totalorder %s506_s6, %s500_s30 }
  0x5e   : > { %v216_v14 = vadd.f32 %v215_v13, %v212_v12 }
  0x5f   : > { %p509_p6 = por %p508_p0, %p507_p5 }
  0x60   : > { %217 = vadd.xlane.f32.xlu0 %v216_v14 }
  0x61   : > { %p510_p13 = pnand %p509_p6, %p503_p4 }
  0xed   : > { %v218_v16 = vpop.xlane.xlu0 %217 }
  0xee   : > { %v219_v17 = vmul.f32 0.0009765625, %v218_v16 }
  0xf0   : > { %v221_v18 = vmul.f32 %v220_v15, %v219_v17 }
  0xf2   : > { %v223_v19 = vsel %vm222_vm0, %v221_v18, 0.0 }
  0xf3   : > { %v224_v20 = vrot.slane %v223_v19, 4 }
  0xf5   : > { %v225_v21 = vadd.f32 %v224_v20, %v223_v19 }
  0xf7   : > { %v226_v22 = vrot.slane %v225_v21, 2 }
  0xf9   : > { %v227_v23 = vadd.f32 %v226_v22, %v225_v21 }
  0xfb   : > { %v228_v24 = vrot.slane %v227_v23, 1 }
  0xfd   : > { %v229_v26 = vadd.f32 %v228_v24, %v227_v23 }
  0xff   : > { %v231_v27 = vadd.f32 %v230_v25, %v229_v26 }
 0x101   : > { %v369_v28 = vmul.f32 -1.442695, %v231_v27 }
 0x103   : > { %438 = vpow2.f32 %v369_v28 }
 0x10d   : > { %v439_v29 = vpop.eup %438 }
 0x10e   : > { %v235_v30 = vadd.f32 1.0, %v439_v29 }
 0x110   : > { %440 = vrcp.f32 %v235_v30 }
 0x11a   : > { %v441_v34 = vpop.eup %440 }
 0x11b   : > { %v241_v35 = vrot.slane %v441_v34, %v240_v33 }
 0x11d   : > { %243 = vbcast.lane.b32.xlu0 %v241_v35, 256 }
 0x18f   : > { %v244_v36 = vpop.permute.xlu0 %243 }
 0x190   : > { %v245_v37 = vmul.f32 %v244_v36, %v202_v0  ;;  %v246_v38 = vmul.f32 %v244_v36, %v203_v1  ;;  %v247_v39 = vmul.f32 %v244_v36, %v204_v2  ;;  %v248_v40 = vmul.f32 %v244_v36, %v205_v3 }
 0x191   : > { %v249_v41 = vmul.f32 %v244_v36, %v206_v4  ;;  %v250_v42 = vmul.f32 %v244_v36, %v207_v5  ;;  %v251_v43 = vmul.f32 %v244_v36, %v208_v7  ;;  %v252_v44 = vmul.f32 %v244_v36, %v209_v9 }
 0x192   : > { %253 = vst [vmem:[%s201_s7] sm:$0xff] %v245_v37  ;;  %254 = vst [vmem:[%s201_s7 + $0x8] sm:$0xff] %v246_v38 }
 0x193   : > { %255 = vst [vmem:[%s201_s7 + $0x10] sm:$0xff] %v247_v39  ;;  %256 = vst [vmem:[%s201_s7 + $0x18] sm:$0xff] %v248_v40 }
 0x194   : > { %257 = vst [vmem:[%s201_s7 + $0x20] sm:$0xff] %v249_v41  ;;  %258 = vst [vmem:[%s201_s7 + $0x28] sm:$0xff] %v250_v42 }
 0x195   : > { %259 = vst [vmem:[%s201_s7 + $0x30] sm:$0xff] %v251_v43  ;;  %260 = vst [vmem:[%s201_s7 + $0x38] sm:$0xff] %v252_v44 }
 0x196   : > { %513 = shalt.err (!%p510_p13)
}
 0x197   : > { %s514_s8 = scalar_lea.hbm %s758_s20, 1024  ;;  %s518_s5 = scalar_lea.hbm %s807_s3, 2048 }
 0x198   : > { %p515_p7 = scmp.ne.s32.totalorder %s758_s20, %s514_s8  ;;  %p519_p1 = scmp.lt.u32.totalorder %s758_s20, %s807_s3 }
 0x199   : > { %p520_p11 = scmp.lt.u32.totalorder %s518_s5, %s514_s8  ;;  %p522_p9 = scmp.lt.u32.totalorder %s514_s8, %s758_s20 }
 0x19a   : > { %p516_p3 = pnand %p515_p7, %p826_p10 }
 0x19b   : > { %p521_p8 = por %p520_p11, %p519_p1 }
 0x19c   : > { %p517_p12 = pneg %p516_p3 }
 0x19d   : > { %p523_p2 = por %p522_p9, %p521_p8 }
 0x19f   : > { %p524_p4 = pnand %p523_p2, %p517_p12 }
 0x1a1   : > { %527 = shalt.err (!%p524_p4)
}
 0x1a2   : > { %s577_s26 = smov 256   ;;  %s578_s4 = smov 16  }
 0x1a3   : > { %383 = dma.vmem_to_hbm [thread:$0]  (%p826_p10), %s760_s10, 1024, %s758_s20, %s262_s16, %s577_s26, %s577_s26, %s578_s4  }
 0x1a4 PF: > { %s290_s7 = sand.u32 1, %s558_s12   ;;  %p827_p5 = scmp.ne.s32.totalorder %s816_s25, 0 }
 0x1a5   : > { %p828_p0 = scmp.ge.s32.totalorder %s570_s15, 2  ;;  %s291_s29 = scalar_lea.sflag [#allocation4], %s290_s7 }
 0x1a7   : > { %p394_p6 = pnand %p828_p0, %p827_p5 }
 0x1a9   : > { %553 = dma.done.wait (!%p394_p6), %s291_s29, 1024  }
 0x1aa   : > { %555 = vsyncadd (!%p394_p6), %s291_s29, 4294966272  ;;  %p17_p13 = scmp.ge.s32.totalorder %s624_s18, 4   ;;  %s829_s12 = smov %s562_s13 }
 0x1ab   : > { %s830_s13 = smov %s566_s14  ;;  %s831_s14 = smov %s636_s21 }
 0x1ac   : > { %s832_s15 = smov %s624_s18  ;;  %19 = sbr.rel (!%p17_p13) target bundleno = 6 (0x6), region = 81 }
 0x1b3   :  { %296 = vsyncpa [#allocation3], 1 }
 0x1b4   :  { %298 = vsyncpa [#allocation3 + $0x1], 1 }
 0x1b5   :  { %299 = vsyncpa [#allocation6], 1 }
 0x1b6   :  { %300 = vsyncpa [#allocation4], 1 }
 0x1b7   :  { %302 = vsyncpa [#allocation4 + $0x1], 1 }

</bundles_post_ra>
